<compile_context>
chip_gen: v5e
topology: v5e:2x2
jax: 0.10.0
libtpu: 0.0.40
codegen_flags: <defaults>
</compile_context>

<pallas_src>
import math

import jax
import jax.numpy as jnp
from jax.experimental import pallas as pl
from jax.experimental.pallas import tpu as pltpu


_VMEM_LIMIT_BYTES = 48 << 20   # > default scoped limit everywhere, < v7x 64 MiB physical
_SEQ_BLOCK_TARGET = 512        # multiple of 8 -> always a legal 2nd-to-last block dim
_X_BLOCK_BUDGET = 4 << 20      # ~4 MiB per tensor block (streaming kernel, amortize step cost)


# ---------------------------------------------------------------------------
# Pallas kernels
# ---------------------------------------------------------------------------
def _rotary_math(x, cos, sin_folded):
    # x: (bn, bl, D); cos/sin_folded: (1, bl, D) f32 (sin has the rotate_half
    # sign folded in).  roll by D/2 swaps the two halves: [x1,x2] -> [x2,x1];
    # combined with [-sin_half, sin_half] this equals rotate_half(x)*sin with
    # no concatenate / negated-slice VMEM copies (roll runs on the XLU slot).
    x = x.astype(jnp.float32)
    half = x.shape[-1] // 2
    rolled = pltpu.roll(x, shift=half, axis=x.ndim - 1)
    return x * cos + rolled * sin_folded


def _rotary_qk_kernel(q_ref, k_ref, cos_ref, sin_ref, qo_ref, ko_ref):
    cos = cos_ref[...][None]
    sin = sin_ref[...][None]
    qo_ref[...] = _rotary_math(q_ref[...], cos, sin).astype(qo_ref.dtype)
    ko_ref[...] = _rotary_math(k_ref[...], cos, sin).astype(ko_ref.dtype)


def _rotary_kernel(x_ref, cos_ref, sin_ref, o_ref):
    o_ref[...] = _rotary_math(
        x_ref[...], cos_ref[...][None], sin_ref[...][None]
    ).astype(o_ref.dtype)


# ---------------------------------------------------------------------------
# Tables (pure JAX glue — replaces the module's stateful buffer cache)
# ---------------------------------------------------------------------------
def rotary_tables(seq_len, dim, base=10000.0):
    inv_freq = 1.0 / (base ** (jnp.arange(0, dim, 2, dtype=jnp.float32) / dim))
    t = jnp.arange(seq_len, dtype=jnp.float32)
    freqs = jnp.outer(t, inv_freq)                       # (L, D/2)
    cos = jnp.cos(jnp.concatenate([freqs, freqs], -1))   # (L, D)
    s = jnp.sin(freqs)
    # rotate_half(x) * sin  ==  roll(x, D/2) * concat(-sin_half, sin_half)
    sin_folded = jnp.concatenate([-s, s], axis=-1)       # (L, D), sign folded in
    return cos, sin_folded


# ---------------------------------------------------------------------------
# Tiling helpers
# ---------------------------------------------------------------------------
def _pick_blocks(N, L, D, itemsize):
    # Seq block: full L when small (block == full dim is always legal),
    # otherwise a fixed 512 (multiple of 8); pl.cdiv + masked edge blocks
    # handle any remainder, so no divisor hunting / degenerate fallbacks.
    bl = L if L <= _SEQ_BLOCK_TARGET else _SEQ_BLOCK_TARGET
    per_lead_row = max(1, bl * D * itemsize)
    bn = max(1, min(N, _X_BLOCK_BUDGET // per_lead_row))
    # v7x megacore: make sure at least one parallel grid axis has extent >= 2.
    if pl.cdiv(L, bl) == 1 and pl.cdiv(N, bn) == 1 and N >= 2:
        bn = pl.cdiv(N, 2)
    return bn, bl


def _grid_and_specs(N, L, D, bn, bl):
    # Seq axis OUTER, leading axis INNER: the cos/sin block index only depends
    # on the outer index, so it is unchanged across consecutive inner steps and
    # Pallas elides the repeated table DMA.
    grid = (pl.cdiv(L, bl), pl.cdiv(N, bn))
    x_spec = pl.BlockSpec((bn, bl, D), lambda j, i: (i, j, 0))
    tab_spec = pl.BlockSpec((bl, D), lambda j, i: (j, 0))
    return grid, x_spec, tab_spec


def _to3(x):
    *lead, L, D = x.shape
    return x.reshape(math.prod(lead) if lead else 1, L, D)


# ---------------------------------------------------------------------------
# pallas_call wrappers
# ---------------------------------------------------------------------------
def _apply_rotary_fused(q3, k3, cos, sin_folded):
    N, L, D = q3.shape
    itemsize = jnp.dtype(q3.dtype).itemsize
    bn, bl = _pick_blocks(N, L, D, itemsize)
    grid, x_spec, tab_spec = _grid_and_specs(N, L, D, bn, bl)

    cost = pl.CostEstimate(
        flops=2 * 3 * N * L * D,
        transcendentals=0,
        bytes_accessed=4 * N * L * D * itemsize + 2 * L * D * 4,
    )

    return pl.pallas_call(
        _rotary_qk_kernel,
        out_shape=(jax.ShapeDtypeStruct((N, L, D), q3.dtype),
                   jax.ShapeDtypeStruct((N, L, D), k3.dtype)),
        grid=grid,
        in_specs=[x_spec, x_spec, tab_spec, tab_spec],
        out_specs=(x_spec, x_spec),
        compiler_params=pltpu.CompilerParams(
            dimension_semantics=("parallel", "parallel"),
            vmem_limit_bytes=_VMEM_LIMIT_BYTES,
        ),
        cost_estimate=cost,
    )(q3, k3, cos, sin_folded)


def _apply_rotary_single(x3, cos, sin_folded):
    N, L, D = x3.shape
    itemsize = jnp.dtype(x3.dtype).itemsize
    bn, bl = _pick_blocks(N, L, D, itemsize)
    grid, x_spec, tab_spec = _grid_and_specs(N, L, D, bn, bl)

    cost = pl.CostEstimate(
        flops=3 * N * L * D,
        transcendentals=0,
        bytes_accessed=2 * N * L * D * itemsize + 2 * L * D * 4,
    )

    return pl.pallas_call(
        _rotary_kernel,
        out_shape=jax.ShapeDtypeStruct((N, L, D), x3.dtype),
        grid=grid,
        in_specs=[x_spec, tab_spec, tab_spec],
        out_specs=x_spec,
        compiler_params=pltpu.CompilerParams(
            dimension_semantics=("parallel", "parallel"),
            vmem_limit_bytes=_VMEM_LIMIT_BYTES,
        ),
        cost_estimate=cost,
    )(x3, cos, sin_folded)


def rotary_forward(q, k, v, base=10000.0):
    """Matches Rotary.forward: returns (rot(q), rot(k), v)."""
    dim = q.shape[-1]
    assert dim % 2 == 0, "rotary dim must be even"
    q_len, k_len = q.shape[-2], k.shape[-2]
    seq_len = max(q_len, k_len)
    cos, sin_folded = rotary_tables(seq_len, dim, base)

    if q.shape == k.shape:
        # Fused path: one kernel launch, tables DMA'd once (no slicing needed).
        qo3, ko3 = _apply_rotary_fused(_to3(q), _to3(k), cos, sin_folded)
        return qo3.reshape(q.shape), ko3.reshape(k.shape), v

    # GQA / cross-attention fallback: separate calls, slice tables only when
    # the operand's seq_len differs from the table length.
    def one(x, L):
        c = cos if L == seq_len else cos[:L]
        s = sin_folded if L == seq_len else sin_folded[:L]
        return _apply_rotary_single(_to3(x), c, s).reshape(x.shape)

    # v passes through unchanged — no kernel (identity, zero HBM traffic added).
    return one(q, q_len), one(k, k_len), v


# ---------------------------------------------------------------------------
# Pure-JAX reference (mirrors the PyTorch module exactly)
# ---------------------------------------------------------------------------
def _reference(q, k, v, base=10000.0):
    dim = q.shape[-1]
    seq_len = max(q.shape[-2], k.shape[-2])
    inv_freq = 1.0 / (base ** (jnp.arange(0, dim, 2, dtype=jnp.float32) / dim))
    t = jnp.arange(seq_len, dtype=jnp.float32)
    freqs = jnp.outer(t, inv_freq)
    emb = jnp.concatenate([freqs, freqs], axis=-1)
    cos, sin = jnp.cos(emb), jnp.sin(emb)

    def rot_half(x):
        x1, x2 = jnp.split(x, 2, axis=-1)
        return jnp.concatenate([-x2, x1], axis=-1)

    ql, kl = q.shape[-2], k.shape[-2]
    qo = q * cos[:ql] + rot_half(q) * sin[:ql]
    ko = k * cos[:kl] + rot_half(k) * sin[:kl]
    return qo, ko, v


# ---------------------------------------------------------------------------
if __name__ == "__main__":
    # (..., seq_len, dim) as the module assumes; typical LLM layout (b, h, l, d).
    # dim=128 keeps the rotary/lane dim lane-dense (unmasked vst stores).
    batch, heads, seq, dim = 2, 2, 8, 128

    key = jax.random.PRNGKey(0)
    kq, kk, kv = jax.random.split(key, 3)
    q = jax.random.normal(kq, (batch, heads, seq, dim), dtype=jnp.float32)
    k = jax.random.normal(kk, (batch, heads, seq, dim), dtype=jnp.float32)
    v = jax.random.normal(kv, (batch, heads, seq, dim), dtype=jnp.float32)

    # Fused q/k path.
    q_out, k_out, v_out = rotary_forward(q, k, v)
    jax.block_until_ready((q_out, k_out, v_out))

    q_ref, k_ref, v_ref = _reference(q, k, v)
    assert q_out.shape == q.shape and k_out.shape == k.shape
    assert jnp.allclose(q_out, q_ref, atol=1e-4, rtol=1e-4)
    assert jnp.allclose(k_out, k_ref, atol=1e-4, rtol=1e-4)
    assert jnp.allclose(v_out, v_ref)

    # Fallback (shape-mismatched) path: fewer KV heads, same seq.
    k_gqa = k[:, :1]
    v_gqa = v[:, :1]
    q_out2, k_out2, v_out2 = rotary_forward(q, k_gqa, v_gqa)
    jax.block_until_ready((q_out2, k_out2, v_out2))
    q_ref2, k_ref2, _ = _reference(q, k_gqa, v_gqa)
    assert jnp.allclose(q_out2, q_ref2, atol=1e-4, rtol=1e-4)
    assert jnp.allclose(k_out2, k_ref2, atol=1e-4, rtol=1e-4)

    print("KERNEL_OK")
</pallas_src>

<mosaic_0001>
module attributes {stable_mosaic.version = 11 : i64} {
  func.func @_rotary_qk_kernel(%arg0: i32, %arg1: i32, %arg2: memref<2x8x128xf32, #tpu.memory_space<vmem>>, %arg3: memref<2x8x128xf32, #tpu.memory_space<vmem>>, %arg4: memref<8x128xf32, #tpu.memory_space<vmem>>, %arg5: memref<8x128xf32, #tpu.memory_space<vmem>>, %arg6: memref<2x8x128xf32, #tpu.memory_space<vmem>>, %arg7: memref<2x8x128xf32, #tpu.memory_space<vmem>>) attributes {dimension_semantics = [#tpu.dimension_semantics<parallel>, #tpu.dimension_semantics<parallel>], iteration_bounds = array<i64: 1, 2>, scalar_prefetch = 0 : i64, scratch_operands = 0 : i64, tpu.core_type = #tpu.core_type<tc>, window_params = [{transform_indices = @transform_0, window_bounds = array<i64: 2, 8, 128>}, {transform_indices = @transform_1, window_bounds = array<i64: 2, 8, 128>}, {transform_indices = @transform_2, window_bounds = array<i64: 8, 128>}, {transform_indices = @transform_3, window_bounds = array<i64: 8, 128>}, {transform_indices = @transform_4, window_bounds = array<i64: 2, 8, 128>}, {transform_indices = @transform_5, window_bounds = array<i64: 2, 8, 128>}]} {
    %c0 = arith.constant 0 : index
    %c0_0 = arith.constant 0 : index
    %0 = vector.load %arg4[%c0, %c0_0] : memref<8x128xf32, #tpu.memory_space<vmem>>, vector<8x128xf32>
    %1 = vector.shape_cast %0 : vector<8x128xf32> to vector<1x8x128xf32>
    %c0_1 = arith.constant 0 : index
    %c0_2 = arith.constant 0 : index
    %2 = vector.load %arg5[%c0_1, %c0_2] : memref<8x128xf32, #tpu.memory_space<vmem>>, vector<8x128xf32>
    %3 = vector.shape_cast %2 : vector<8x128xf32> to vector<1x8x128xf32>
    %c0_3 = arith.constant 0 : index
    %c0_4 = arith.constant 0 : index
    %c0_5 = arith.constant 0 : index
    %4 = vector.load %arg2[%c0_3, %c0_4, %c0_5] : memref<2x8x128xf32, #tpu.memory_space<vmem>>, vector<2x8x128xf32>
    %c64_i32 = arith.constant 64 : i32
    %5 = tpu.dynamic_rotate %4 by %c64_i32 dim 2 : vector<2x8x128xf32>, i32 -> vector<2x8x128xf32>
    %6 = vector.broadcast %1 : vector<1x8x128xf32> to vector<2x8x128xf32>
    %7 = arith.mulf %4, %6 : vector<2x8x128xf32>
    %8 = vector.broadcast %3 : vector<1x8x128xf32> to vector<2x8x128xf32>
    %9 = arith.mulf %5, %8 : vector<2x8x128xf32>
    %10 = arith.addf %7, %9 : vector<2x8x128xf32>
    %c0_6 = arith.constant 0 : index
    %c0_7 = arith.constant 0 : index
    %c0_8 = arith.constant 0 : index
    %11 = vector.load %arg6[%c0_6, %c0_7, %c0_8] : memref<2x8x128xf32, #tpu.memory_space<vmem>>, vector<2x8x128xf32>
    tpu.vector_store %arg6[%c0_6, %c0_7, %c0_8], %10 {strides = array<i32>} : memref<2x8x128xf32, #tpu.memory_space<vmem>>, vector<2x8x128xf32>,
    %c0_9 = arith.constant 0 : index
    %c0_10 = arith.constant 0 : index
    %c0_11 = arith.constant 0 : index
    %12 = vector.load %arg3[%c0_9, %c0_10, %c0_11] : memref<2x8x128xf32, #tpu.memory_space<vmem>>, vector<2x8x128xf32>
    %c64_i32_12 = arith.constant 64 : i32
    %13 = tpu.dynamic_rotate %12 by %c64_i32_12 dim 2 : vector<2x8x128xf32>, i32 -> vector<2x8x128xf32>
    %14 = vector.broadcast %1 : vector<1x8x128xf32> to vector<2x8x128xf32>
    %15 = arith.mulf %12, %14 : vector<2x8x128xf32>
    %16 = vector.broadcast %3 : vector<1x8x128xf32> to vector<2x8x128xf32>
    %17 = arith.mulf %13, %16 : vector<2x8x128xf32>
    %18 = arith.addf %15, %17 : vector<2x8x128xf32>
    %c0_13 = arith.constant 0 : index
    %c0_14 = arith.constant 0 : index
    %c0_15 = arith.constant 0 : index
    %19 = vector.load %arg7[%c0_13, %c0_14, %c0_15] : memref<2x8x128xf32, #tpu.memory_space<vmem>>, vector<2x8x128xf32>
    tpu.vector_store %arg7[%c0_13, %c0_14, %c0_15], %18 {strides = array<i32>} : memref<2x8x128xf32, #tpu.memory_space<vmem>>, vector<2x8x128xf32>,
    return
  }
  func.func @transform_0(%arg0: i32, %arg1: i32) -> (i32, i32, i32) {
    %c0_i32 = arith.constant 0 : i32
    %c0_i32_0 = arith.constant 0 : i32
    return %arg1, %arg0, %c0_i32 : i32, i32, i32
  }
  func.func @transform_1(%arg0: i32, %arg1: i32) -> (i32, i32, i32) {
    %c0_i32 = arith.constant 0 : i32
    %c0_i32_0 = arith.constant 0 : i32
    return %arg1, %arg0, %c0_i32 : i32, i32, i32
  }
  func.func @transform_2(%arg0: i32, %arg1: i32) -> (i32, i32) {
    %c0_i32 = arith.constant 0 : i32
    %c0_i32_0 = arith.constant 0 : i32
    return %arg0, %c0_i32 : i32, i32
  }
  func.func @transform_3(%arg0: i32, %arg1: i32) -> (i32, i32) {
    %c0_i32 = arith.constant 0 : i32
    %c0_i32_0 = arith.constant 0 : i32
    return %arg0, %c0_i32 : i32, i32
  }
  func.func @transform_4(%arg0: i32, %arg1: i32) -> (i32, i32, i32) {
    %c0_i32 = arith.constant 0 : i32
    %c0_i32_0 = arith.constant 0 : i32
    return %arg1, %arg0, %c0_i32 : i32, i32, i32
  }
  func.func @transform_5(%arg0: i32, %arg1: i32) -> (i32, i32, i32) {
    %c0_i32 = arith.constant 0 : i32
    %c0_i32_0 = arith.constant 0 : i32
    return %arg1, %arg0, %c0_i32 : i32, i32, i32
  }
}

</mosaic_0001>

<bundles_post_ra>
// kernel: tpu_custom_call.1
= control target key start
LH: loop header
LB: loop body
LE: loop exit
PB: predicated region body
PF: predicated region fallthrough
CT: control target
= control target key end

     0   :  { %s1215_s0 = inlined_call_operand.hbm [shape: f32[4,8,128], index: 0, kind: input, shape index: {}]   ;;  %s1216_s1 = inlined_call_operand.hbm [shape: f32[4,8,128], index: 1, kind: input, shape index: {}]   ;;  %s1217_s2 = inlined_call_operand.hbm [shape: f32[8,128], index: 2, kind: input, shape index: {}]   ;;  %s1218_s3 = inlined_call_operand.hbm [shape: f32[8,128], index: 3, kind: input, shape index: {}]   ;;  %s1219_s4 = inlined_call_operand.hbm [shape: f32[4,8,128], index: 4, kind: output, shape index: {0}]   ;;  %s1220_s5 = inlined_call_operand.hbm [shape: f32[4,8,128], index: 5, kind: output, shape index: {1}]  }
   0x1   :  { %1225 = sst [smem:[#allocation22_spill]] %s1215_s0 }
   0x2   :  { %1226 = sst [smem:[#allocation23_spill]] %s1217_s2 }
   0x3   :  { %1227 = sst [smem:[#allocation24_spill]] %s1218_s3 }
   0x4   :  { %11 = vsyncpa [#allocation3], 0 }
   0x5   :  { %13 = vsyncpa [#allocation3 + $0x1], 0 }
   0x6   :  { %14 = vsyncpa [#allocation6], 0 }
   0x7   :  { %16 = vsyncpa [#allocation6 + $0x1], 0 }
   0x8   :  { %17 = vsyncpa [#allocation9], 0 }
   0x9   :  { %18 = vsyncpa [#allocation4], 0 }
   0xa   :  { %20 = vsyncpa [#allocation4 + $0x1], 0 }
   0xb   :  { %21 = vsyncpa [#allocation12], 0 }
   0xc   :  { %23 = vsyncpa [#allocation12 + $0x1], 0  ;;  %s1019_s18 = smov 0   ;;  %s1021_s19 = smov 0  }
   0xd   :  { %s1023_s20 = smov 0   ;;  %s1025_s21 = smov 0  }
   0xe   :  { %s1027_s22 = smov 0   ;;  %s1029_s23 = smov 0  }
   0xf LB: > { %1228 = sst [smem:[#allocation19_spill]] %s960_s18  ;;  %s1050_s24 = sadd.s32 4294967295, %s980_s23   ;;  %s980_s23 = sphi %s1029_s23, %s29_s23   ;;  %s976_s22 = sphi %s1027_s22, %s1248_s22   ;;  %s972_s21 = sphi %s1025_s21, %s1247_s21   ;;  %s968_s20 = sphi %s1023_s20, %s1246_s20   ;;  %s964_s19 = sphi %s1021_s19, %s1245_s19   ;;  %s960_s18 = sphi %s1019_s18, %s1244_s18  }
  0x10   : > { %s606_s25 = sadd.s32 4294967294, %s980_s23   ;;  %p57_p0 = scmp.ne.s32.totalorder %s968_s20, %s964_s19 }
  0x11   : > { %p58_p1 = scmp.eq.s32.totalorder %s980_s23, 0  ;;  %p63_p2 = scmp.ne.s32.totalorder %s964_s19, %s960_s18 }
  0x12   : > { %p64_p3 = scmp.eq.s32.totalorder %s1050_s24, 0  ;;  %p169_p4 = scmp.eq.s32.totalorder %s1050_s24, 1 }
  0x13   : > { %p1061_p5 = por %p58_p1, %p57_p0  ;;  %p175_p6 = scmp.eq.s32.totalorder %s606_s25, 1 }
  0x14   : > { %p1067_p7 = por %p64_p3, %p63_p2  ;;  %p1071_p8 = por %p169_p4, %p57_p0 }
  0x15   : > { %p1075_p9 = por %p175_p6, %p63_p2  ;;  %p607_p10 = scmp.ge.s32.totalorder %s980_s23, 1 }
  0x16   : > { %s1231_s29 = scalar_select %p1071_p8, 1, 0 }
  0x17   : > { %s1233_s30 = scalar_select %p1075_p9, 1, 0 }
  0x18   : > { %1232 = sst [smem:[#allocation20_spill]] %s1231_s29  ;;  %p210_p11 = scmp.lt.s32.totalorder %s980_s23, 3 }
  0x19   : > { %1234 = sst [smem:[#allocation21_spill]] %s1233_s30  ;;  %s982_s10 = smov [#allocation7]  }
  0x1a   : > { %s1235_s2 = sld [smem:[#allocation23_spill]]  ;;  %p1084_p12 = pnand %p607_p10, %p210_p11 }
  0x1b   : > { %s226_s11 = sshll.u32 %s982_s10, 4  ;;  %p610_p13 = scmp.ge.s32.totalorder %s980_s23, 2  ;;  %s227_s11 = int_to_ptr.vmem [resolvable:$true] %s226_s11 }
  0x1c   : > { %p652_p0 = pneg %p1084_p12  ;;  %p675_p1 = scmp.lt.s32.totalorder %s980_s23, 2 }
  0x1d   : > { %s1237_s3 = sld [smem:[#allocation24_spill]]  ;;  %s983_s16 = smov [#allocation8]  }
  0x1e   : > { %p653_p2 = pnand %p652_p0, %p64_p3  ;;  %p1099_p4 = pnand %p675_p1, %p1061_p5 }
  0x1f   : > { %s240_s17 = sshll.u32 %s983_s16, 4  ;;  %s251_s25 = sand.u32 1, %s968_s20   ;;  %s241_s17 = int_to_ptr.vmem [resolvable:$true] %s240_s17 }
  0x20   : > { %s224_s8 = sshll.u32 %s1235_s2, 4  ;;  %s38_s6 = sadd.s32 1, %s976_s22  ;;  %s225_s8 = int_to_ptr.hbm [resolvable:$true] %s224_s8 }
  0x21   : > { %655 = dma.hbm_to_vmem [thread:$0]  (!%p653_p2), %s225_s8, 128, %s227_s11, [#allocation6]  }
  0x22   : > { %s611_s7 = sshll.u32 %s251_s25, 4  ;;  %p39_p6 = scmp.ge.s32.totalorder %s38_s6, 2 }
  0x23   : > { %s238_s14 = sshll.u32 %s1237_s3, 4  ;;  %s632_s10 = sshll.u32 %s976_s22, 4  ;;  %s239_s14 = int_to_ptr.hbm [resolvable:$true] %s238_s14 }
  0x24   : > { %658 = dma.hbm_to_vmem [thread:$0]  (!%p653_p2), %s239_s14, 128, %s241_s17, [#allocation9]  }
  0x25   : > { %s255_s12 = scalar_lea.vmem [#allocation2], %s611_s7  ;;  %s1250_s6 = smov (%p39_p6, %s38_s6), 0 }
  0x26   : > { %s264_s27 = sshll.u32 %s255_s12, 4  ;;  %s1239_s0 = sld [smem:[#allocation22_spill]]  ;;  %s265_s27 = int_to_ptr.vmem [resolvable:$true] %s264_s27 }
  0x27   : > { %s45_s8 = ssub.s32 %s976_s22, %s1250_s6  ;;  %s1240_s14 = sadd.s32 1, %s968_s20 }
  0x28   : > { %p48_p5 = scmp.eq.s32.totalorder %s45_s8, 0  ;;  %s252_s2 = scalar_lea.sflag [#allocation3], %s251_s25 }
  0x29   : > { %s984_s3 = smov 128   ;;  %s985_s12 = smov 8  }
  0x2a   : > { %s1116_s17 = scalar_select %p48_p5, %s968_s20, %s1240_s14  }
  0x2b   : > { %s284_s26 = scalar_lea.hbm %s1216_s1, %s632_s10  ;;  %s1129_s25 = sand.u32 (!%p1084_p12), 1, %s964_s19  }
  0x2c   : > { %s261_s16 = scalar_lea.hbm %s1239_s0, %s632_s10  ;;  %s285_s13 = sshll.u32 %s284_s26, 4  ;;  %s286_s13 = int_to_ptr.hbm [resolvable:$true] %s285_s13 }
  0x2d   : > { %s262_s11 = sshll.u32 %s261_s16, 4  ;;  %s278_s0 = scalar_lea.vmem [#allocation5], %s611_s7  ;;  %s263_s11 = int_to_ptr.hbm [resolvable:$true] %s262_s11 }
  0x2e   : > { %662 = dma.hbm_to_vmem [thread:$0]  (!%p1099_p4), %s263_s11, 256, %s265_s27, %s252_s2, %s984_s3, %s984_s3, %s985_s12  }
  0x2f   : > { %s287_s29 = sshll.u32 %s278_s0, 4  ;;  %s274_s16 = sand.u32 1, %s980_s23   ;;  %s288_s29 = int_to_ptr.vmem [resolvable:$true] %s287_s29 }
  0x30   : > { %s275_s8 = scalar_lea.sflag [#allocation6], %s274_s16  ;;  %299 = sbr.rel (%p1084_p12) target bundleno = 206 (0xce), region = 36 }
  0x31   : > { %665 = dma.hbm_to_vmem [thread:$0]  (!%p1099_p4), %s286_s13, 256, %s288_s29, %s275_s8, %s984_s3, %s984_s3, %s985_s12  }
  0x32   : > { %s1132_s2 = sshll.u32 (!%p1084_p12), %s1129_s25, 4  ;;  %s302_s18 = scalar_lea.sflag (!%p1084_p12), [#allocation3], %s1129_s25 }
  0x33   : > { %s305_s0 = scalar_lea.vmem (!%p1084_p12), [#allocation2], %s1132_s2 }
  0x35   : > { %935 = dma.done.wait (%p1067_p7), %s302_s18, 256  }
  0x36   : > { %937 = vsyncadd (%p1067_p7), %s302_s18, 4294967040  ;;  %s311_s3 = sand.u32 1, %s1050_s24   ;;  %s315_s30 = scalar_lea.vmem [#allocation5], %s1132_s2 }
  0x37   : > { %s312_s29 = scalar_lea.sflag [#allocation6], %s311_s3 }
  0x38   : > { %939 = dma.done.wait (%p1067_p7), %s312_s29, 256  }
  0x39   : > { %941 = vsyncadd (%p1067_p7), %s312_s29, 4294967040 }
  0x3a   : > { %943 = dma.done.wait (%p64_p3), [#allocation6], 128  }
  0x3b   : > { %945 = vsyncadd (%p64_p3), [#allocation6], 4294967168 }
  0x3c   : > { %947 = dma.done.wait (%p64_p3), [#allocation9], 128  }
  0x3d   : > { %949 = vsyncadd (%p64_p3), [#allocation9], 4294967168  ;;  %v383_v0 = vld [vmem:[%s315_s30] sm:$0xff]  ;;  %s986_s9 = smov 64   ;;  %v384_v2 = vld [vmem:[%s315_s30 + $0x8] sm:$0xff]  ;;  %s634_s24 = sshll.u32 %s972_s21, 4 }
  0x3e   : > { %v369_v1 = vld [vmem:[%s305_s0] sm:$0xff]  ;;  %385 = vrot.lane.b32.xlu1 %v383_v0, %s986_s9  ;;  %v370_v3 = vld [vmem:[%s305_s0 + $0x8] sm:$0xff]  ;;  %s362_s28 = scalar_lea.vmem [#allocation11], %s1132_s2  ;;  %s415_s10 = scalar_lea.hbm %s1219_s4, %s634_s24 }
  0x3f   : > { %371 = vrot.lane.b32.xlu0 %v369_v1, %s986_s9  ;;  %v367_v4 = vld [vmem:[#allocation7] sm:$0xff]  ;;  %v368_v5 = vld [vmem:[#allocation8] sm:$0xff]  ;;  %s434_s27 = sshll.u32 %s362_s28, 4  ;;  %s355_s11 = scalar_lea.vmem [#allocation10], %s1132_s2  ;;  %s1163_s27 = int_to_ptr.vmem [resolvable:$true] %s434_s27 }
  0x40   : > { %v389_v6 = vmul.f32 %v383_v0, %v367_v4  ;;  %v375_v7 = vmul.f32 %v369_v1, %v367_v4  ;;  %v390_v14 = vmul.f32 %v384_v2, %v367_v4  ;;  %v376_v15 = vmul.f32 %v370_v3, %v367_v4  ;;  %s416_s14 = sshll.u32 %s355_s11, 4  ;;  %s433_s13 = scalar_lea.hbm %s1220_s5, %s634_s24  ;;  %s417_s14 = int_to_ptr.vmem [resolvable:$true] %s416_s14 }
  0x41   : > { %s418_s21 = sshll.u32 %s415_s10, 4  ;;  %s436_s8 = sshll.u32 %s433_s13, 4  ;;  %s419_s21 = int_to_ptr.hbm [resolvable:$true] %s418_s21  ;;  %s1165_s8 = int_to_ptr.hbm [resolvable:$true] %s436_s8 }
  0x42   : > { %s398_s2 = scalar_lea.sflag [#allocation4], %s1129_s25  ;;  %s868_s18 = sshra.s32 %s419_s21, 4  ;;  %s869_s18 = int_to_ptr.hbm [resolvable:$true] %s868_s18 }
  0x43   : > { %s870_s0 = scalar_lea.hbm %s869_s18, 16  ;;  %s874_s30 = scalar_lea.hbm %s1219_s4, 32 }
  0x44   : > { %p871_p3 = scmp.ne.s32.totalorder %s869_s18, %s870_s0  ;;  %p875_p11 = scmp.lt.s32.totalorder %s869_s18, %s1219_s4 }
  0x45   : > { %p876_p12 = scmp.lt.s32.totalorder %s874_s30, %s870_s0 }
  0x46   : > { %387 = vrot.lane.b32.xlu1 %v384_v2, %s986_s9  ;;  %p872_p7 = pnand %p871_p3, %p1071_p8 }
  0x47   : > { %373 = vrot.lane.b32.xlu0 %v370_v3, %s986_s9  ;;  %p877_p0 = por %p876_p12, %p875_p11 }
  0x48   : > { %p873_p10 = pneg %p872_p7 }
  0x4a   : > { %p878_p1 = pnand %p877_p0, %p873_p10 }
  0xb0   : > { %v386_v8 = vpop.permute.xlu1 %385 }
  0xb1   : > { %v372_v9 = vpop.permute.xlu0 %371  ;;  %v391_v10 = vmul.f32 %v386_v8, %v368_v5 }
  0xb2   : > { %v377_v11 = vmul.f32 %v372_v9, %v368_v5 }
  0xb3   : > { %v393_v12 = vadd.f32 %v391_v10, %v389_v6 }
  0xb4   : > { %v379_v13 = vadd.f32 %v377_v11, %v375_v7 }
  0xb5   : > { %395 = vst [vmem:[%s362_s28] sm:$0xff] %v393_v12 }
  0xb6   : > { %381 = vst [vmem:[%s355_s11] sm:$0xff] %v379_v13 }
  0xb8   : > { %v388_v16 = vpop.permute.xlu1 %387 }
  0xb9   : > { %v374_v17 = vpop.permute.xlu0 %373  ;;  %v392_v18 = vmul.f32 %v388_v16, %v368_v5 }
  0xba   : > { %v378_v19 = vmul.f32 %v374_v17, %v368_v5 }
  0xbb   : > { %v394_v20 = vadd.f32 %v392_v18, %v390_v14 }
  0xbc   : > { %v380_v21 = vadd.f32 %v378_v19, %v376_v15 }
  0xbd   : > { %396 = vst [vmem:[%s362_s28 + $0x8] sm:$0xff] %v394_v20 }
  0xbe   : > { %382 = vst [vmem:[%s355_s11 + $0x8] sm:$0xff] %v380_v21 }
  0xbf   : > { %881 = shalt.err (!%p878_p1)
}
  0xc0   : > { %s987_s28 = smov 128   ;;  %s988_s15 = smov 8  }
  0xc1   : > { %648 = dma.vmem_to_hbm [thread:$0]  (%p1071_p8), %s417_s14, 256, %s419_s21, %s398_s2, %s987_s28, %s987_s28, %s988_s15  }
  0xc2   : > { %s403_s7 = scalar_lea.sflag [#allocation12], %s1129_s25  ;;  %s896_s10 = sshra.s32 %s1165_s8, 4  ;;  %s897_s10 = int_to_ptr.hbm [resolvable:$true] %s896_s10 }
  0xc3   : > { %s898_s11 = scalar_lea.hbm %s897_s10, 16  ;;  %s902_s13 = scalar_lea.hbm %s1220_s5, 32 }
  0xc4   : > { %p899_p2 = scmp.ne.s32.totalorder %s897_s10, %s898_s11  ;;  %p903_p5 = scmp.lt.s32.totalorder %s897_s10, %s1220_s5 }
  0xc5   : > { %p904_p3 = scmp.lt.s32.totalorder %s902_s13, %s898_s11 }
  0xc6   : > { %p900_p4 = pnand %p899_p2, %p1071_p8 }
  0xc7   : > { %p905_p7 = por %p904_p3, %p903_p5 }
  0xc8   : > { %p901_p6 = pneg %p900_p4 }
  0xca   : > { %p906_p10 = pnand %p905_p7, %p901_p6 }
  0xcc   : > { %909 = shalt.err (!%p906_p10)
}
  0xcd   : > { %649 = dma.vmem_to_hbm [thread:$0]  (%p1071_p8), %s1163_s27, 256, %s1165_s8, %s403_s7, %s987_s28, %s987_s28, %s988_s15  }
  0xce PF: > { %s1242_s25 = sld [smem:[#allocation19_spill]]  ;;  %p667_p11 = pnand %p610_p13, %p1075_p9 }
  0xd0   : > { %p668_p12 = pneg %p667_p11 }
  0xd4   : > { %s451_s21 = sand.u32 1, %s1242_s25  }
  0xd5   : > { %s452_s2 = scalar_lea.sflag [#allocation4], %s451_s21 }
  0xd6   : > { %951 = dma.done.wait (%p668_p12), %s452_s2, 256  }
  0xd7   : > { %953 = vsyncadd (%p668_p12), %s452_s2, 4294967040  ;;  %s462_s3 = scalar_lea.sflag [#allocation12], %s451_s21 }
  0xd8   : > { %955 = dma.done.wait (%p668_p12), %s462_s3, 256  }
  0xd9   : > { %957 = vsyncadd (%p668_p12), %s462_s3, 4294967040  ;;  %s29_s23 = sadd.s32 1, %s980_s23   ;;  %s1244_s18 = smov %s964_s19 }
  0xda   : > { %p26_p0 = scmp.ge.s32.totalorder %s29_s23, 4   ;;  %s1245_s19 = smov %s968_s20 }
  0xdb   : > { %s1246_s20 = smov %s1116_s17  ;;  %s1247_s21 = smov %s976_s22 }
  0xdc   : > { %s1248_s22 = smov %s1250_s6  ;;  %28 = sbr.rel (!%p26_p0) target bundleno = 15 (0xf), region = 121 }
  0xe1   :  { %468 = vsyncpa [#allocation3], 1 }
  0xe2   :  { %470 = vsyncpa [#allocation3 + $0x1], 1 }
  0xe3   :  { %471 = vsyncpa [#allocation6], 1 }
  0xe4   :  { %473 = vsyncpa [#allocation6 + $0x1], 1 }
  0xe5   :  { %474 = vsyncpa [#allocation9], 1 }
  0xe6   :  { %475 = vsyncpa [#allocation4], 1 }
  0xe7   :  { %477 = vsyncpa [#allocation4 + $0x1], 1 }
  0xe8   :  { %478 = vsyncpa [#allocation12], 1 }
  0xe9   :  { %480 = vsyncpa [#allocation12 + $0x1], 1 }

</bundles_post_ra>
